<compile_context>
chip_gen: v5e
topology: v5e:2x2
jax: 0.10.0
libtpu: 0.0.40
codegen_flags: <defaults>
</compile_context>

<pallas_src>
import jax
import jax.numpy as jnp
from jax.experimental import pallas as pl
from jax.experimental.pallas import tpu as pltpu


def _round_up(x, m):
    return ((x + m - 1) // m) * m


def value_kernel(x_ref, w1_ref, b1_ref, w2_ref, b2_ref, w3_ref, b3_ref, o_ref):
    # x tile: (TB, n_in) f32.  Weights are bf16 (in, out); biases f32.
    x = x_ref[...].astype(jnp.bfloat16)

    # fc1 + ReLU  (MXU matmul, f32 accumulate; bias/ReLU on the VPU in f32)
    h1 = jnp.dot(x, w1_ref[...], preferred_element_type=jnp.float32) + b1_ref[...]
    h1 = jnp.maximum(h1, 0.0)

    # fc2 + ReLU
    h2 = jnp.dot(h1.astype(jnp.bfloat16), w2_ref[...],
                 preferred_element_type=jnp.float32) + b2_ref[...]
    h2 = jnp.maximum(h2, 0.0)

    # v head: output width is 1, so skip the MXU and do a lane reduction.
    # w3 is stored as a (1, fc2) row; b3 is a (1, 1) scalar in SMEM.
    w3_row = w3_ref[...].astype(jnp.float32)                 # (1, fc2)
    o_ref[...] = jnp.sum(h2 * w3_row, axis=-1, keepdims=True) + b3_ref[0, 0]


def value_forward(state, params, *, block_b=512):
    """state: (B, n_inputs) float32. params: dict with bf16 weights / f32 biases
    (weights pre-transposed to (in, out); w3 stored as a (1, fc2) row)."""
    w1, b1 = params["w1"], params["b1"]
    w2, b2 = params["w2"], params["b2"]
    w3, b3 = params["w3"], params["b3"]

    B, n_in = state.shape
    fc1 = w1.shape[1]
    fc2 = w2.shape[1]

    # Batch tile: at most `block_b`, always a multiple of 8 (sublane width).
    tb = min(block_b, _round_up(B, 8))
    b_pad = _round_up(B, tb)
    if b_pad != B:
        state = jnp.pad(state, ((0, b_pad - B), (0, 0)))
    grid = (b_pad // tb,)

    flops = 2 * b_pad * (n_in * fc1 + fc1 * fc2 + fc2)
    bytes_accessed = (w1.size * 2 + w2.size * 2 + w3.size * 2      # bf16 weights
                      + (b1.size + b2.size + b3.size) * 4          # f32 biases
                      + state.size * 4 + b_pad * 4)                # activations in/out

    out = pl.pallas_call(
        value_kernel,
        out_shape=jax.ShapeDtypeStruct((b_pad, 1), jnp.float32),
        grid_spec=pltpu.PrefetchScalarGridSpec(
            num_scalar_prefetch=0,
            grid=grid,
            in_specs=[
                pl.BlockSpec((tb, n_in), lambda i: (i, 0)),     # x: tiled over batch
                pl.BlockSpec((n_in, fc1), lambda i: (0, 0)),    # w1: VMEM-resident
                pl.BlockSpec((1, fc1), lambda i: (0, 0)),       # b1
                pl.BlockSpec((fc1, fc2), lambda i: (0, 0)),     # w2
                pl.BlockSpec((1, fc2), lambda i: (0, 0)),       # b2
                pl.BlockSpec((1, fc2), lambda i: (0, 0)),       # w3 (row)
                pl.BlockSpec(memory_space=pltpu.SMEM),          # b3 scalar in SMEM
            ],
            out_specs=pl.BlockSpec((tb, 1), lambda i: (i, 0)),
        ),
        compiler_params=pltpu.CompilerParams(
            dimension_semantics=("parallel",),                  # v7x: 2 TCs split the batch
        ),
        cost_estimate=pl.CostEstimate(
            flops=flops, transcendentals=0, bytes_accessed=bytes_accessed),
    )(state, w1, b1, w2, b2, w3, b3)

    return out[:B]


def init_value_params(key, n_inputs, fc1_dims=256, fc2_dims=256):
    """Synthetic init mimicking PyTorch's U(-1/sqrt(fan_in), 1/sqrt(fan_in)).
    Weights stored (in, out) in bf16; biases f32; w3 stored as a (1, fc2) row."""
    k1, k2, k3, k4, k5, k6 = jax.random.split(key, 6)

    def u(k, shape, fan_in, dtype):
        bound = 1.0 / jnp.sqrt(fan_in)
        return jax.random.uniform(k, shape, jnp.float32, -bound, bound).astype(dtype)

    return {
        "w1": u(k1, (n_inputs, fc1_dims), n_inputs, jnp.bfloat16),
        "b1": u(k2, (1, fc1_dims), n_inputs, jnp.float32),
        "w2": u(k3, (fc1_dims, fc2_dims), fc1_dims, jnp.bfloat16),
        "b2": u(k4, (1, fc2_dims), fc1_dims, jnp.float32),
        "w3": u(k5, (1, fc2_dims), fc2_dims, jnp.bfloat16),   # row vector (out dim = 1)
        "b3": u(k6, (1, 1), fc2_dims, jnp.float32),
    }


def value_forward_ref(state, p):
    """Pure-JAX reference with identical numerics (bf16 dot inputs, f32 accumulate)."""
    h1 = jnp.dot(state.astype(jnp.bfloat16), p["w1"],
                 preferred_element_type=jnp.float32) + p["b1"]
    h1 = jnp.maximum(h1, 0.0)
    h2 = jnp.dot(h1.astype(jnp.bfloat16), p["w2"],
                 preferred_element_type=jnp.float32) + p["b2"]
    h2 = jnp.maximum(h2, 0.0)
    return jnp.sum(h2 * p["w3"].astype(jnp.float32), axis=-1, keepdims=True) + p["b3"][0, 0]


if __name__ == "__main__":
    key = jax.random.PRNGKey(0)
    k_params, k_state, k_state2 = jax.random.split(key, 3)

    batch = 8
    n_inputs = 8          # small state dim, consistent with Value(n_inputs=(8,))
    fc1_dims = 256
    fc2_dims = 256

    params = init_value_params(k_params, n_inputs, fc1_dims, fc2_dims)

    # Case 1: tiny batch, single grid step.
    state = jax.random.normal(k_state, (batch, n_inputs), jnp.float32)
    out = jax.block_until_ready(value_forward(state, params))
    ref = value_forward_ref(state, params)
    assert out.shape == (batch, 1)
    assert jnp.allclose(out, ref, atol=1e-3, rtol=1e-3)

    # Case 2: multi-tile batch grid (forces block_b < B) — weights stay resident.
    state2 = jax.random.normal(k_state2, (32, n_inputs), jnp.float32)
    out2 = jax.block_until_ready(value_forward(state2, params, block_b=8))
    ref2 = value_forward_ref(state2, params)
    assert out2.shape == (32, 1)
    assert jnp.allclose(out2, ref2, atol=1e-3, rtol=1e-3)

    print("KERNEL_OK")
</pallas_src>

<mosaic_0001>
module attributes {stable_mosaic.version = 11 : i64} {
  func.func @value_kernel(%arg0: i32, %arg1: memref<8x8xf32, #tpu.memory_space<vmem>>, %arg2: memref<8x256xbf16, #tpu.memory_space<vmem>>, %arg3: memref<1x256xf32, #tpu.memory_space<vmem>>, %arg4: memref<256x256xbf16, #tpu.memory_space<vmem>>, %arg5: memref<1x256xf32, #tpu.memory_space<vmem>>, %arg6: memref<1x256xbf16, #tpu.memory_space<vmem>>, %arg7: memref<1x1xf32, #tpu.memory_space<smem>>, %arg8: memref<8x1xf32, #tpu.memory_space<vmem>>) attributes {dimension_semantics = [#tpu.dimension_semantics<parallel>], iteration_bounds = array<i64: 1>, scalar_prefetch = 0 : i64, scratch_operands = 0 : i64, tpu.core_type = #tpu.core_type<tc>, window_params = [{transform_indices = @transform_0, window_bounds = array<i64: 8, 8>}, {pipeline_mode = #tpu.pipeline_mode<synchronous>, transform_indices = @transform_1, window_bounds = array<i64: 8, 256>}, {pipeline_mode = #tpu.pipeline_mode<synchronous>, transform_indices = @transform_2, window_bounds = array<i64: 1, 256>}, {pipeline_mode = #tpu.pipeline_mode<synchronous>, transform_indices = @transform_3, window_bounds = array<i64: 256, 256>}, {pipeline_mode = #tpu.pipeline_mode<synchronous>, transform_indices = @transform_4, window_bounds = array<i64: 1, 256>}, {pipeline_mode = #tpu.pipeline_mode<synchronous>, transform_indices = @transform_5, window_bounds = array<i64: 1, 256>}, {transform_indices = @transform_6, window_bounds = array<i64: 1, 1>}, {transform_indices = @transform_7, window_bounds = array<i64: 8, 1>}]} {
    %c0 = arith.constant 0 : index
    %c0_0 = arith.constant 0 : index
    %0 = vector.load %arg1[%c0, %c0_0] : memref<8x8xf32, #tpu.memory_space<vmem>>, vector<8x8xf32>
    %1 = arith.truncf %0 : vector<8x8xf32> to vector<8x8xbf16>
    %c0_1 = arith.constant 0 : index
    %c0_2 = arith.constant 0 : index
    %2 = vector.load %arg2[%c0_1, %c0_2] : memref<8x256xbf16, #tpu.memory_space<vmem>>, vector<8x256xbf16>
    %cst = arith.constant dense<0.000000e+00> : vector<8x256xf32>
    %3 = tpu.matmul %1, %2, %cst {dimension_numbers = #tpu.dot_dimension_numbers<[1], [0], [0], [1], [0, 0, 1, 1], [], []>} : vector<8x8xbf16>, vector<8x256xbf16>, vector<8x256xf32> -> vector<8x256xf32>
    %c0_3 = arith.constant 0 : index
    %c0_4 = arith.constant 0 : index
    %4 = vector.load %arg3[%c0_3, %c0_4] : memref<1x256xf32, #tpu.memory_space<vmem>>, vector<1x256xf32>
    %5 = vector.broadcast %4 : vector<1x256xf32> to vector<8x256xf32>
    %6 = arith.addf %3, %5 : vector<8x256xf32>
    %cst_5 = arith.constant 0.000000e+00 : f32
    %7 = vector.broadcast %cst_5 : f32 to vector<8x256xf32>
    %8 = arith.maximumf %6, %7 : vector<8x256xf32>
    %9 = arith.truncf %8 : vector<8x256xf32> to vector<8x256xbf16>
    %c0_6 = arith.constant 0 : index
    %c0_7 = arith.constant 0 : index
    %10 = vector.load %arg4[%c0_6, %c0_7] : memref<256x256xbf16, #tpu.memory_space<vmem>>, vector<256x256xbf16>
    %cst_8 = arith.constant dense<0.000000e+00> : vector<8x256xf32>
    %11 = tpu.matmul %9, %10, %cst_8 {dimension_numbers = #tpu.dot_dimension_numbers<[1], [0], [0], [1], [0, 0, 1, 1], [], []>} : vector<8x256xbf16>, vector<256x256xbf16>, vector<8x256xf32> -> vector<8x256xf32>
    %c0_9 = arith.constant 0 : index
    %c0_10 = arith.constant 0 : index
    %12 = vector.load %arg5[%c0_9, %c0_10] : memref<1x256xf32, #tpu.memory_space<vmem>>, vector<1x256xf32>
    %13 = vector.broadcast %12 : vector<1x256xf32> to vector<8x256xf32>
    %14 = arith.addf %11, %13 : vector<8x256xf32>
    %cst_11 = arith.constant 0.000000e+00 : f32
    %15 = vector.broadcast %cst_11 : f32 to vector<8x256xf32>
    %16 = arith.maximumf %14, %15 : vector<8x256xf32>
    %c0_12 = arith.constant 0 : index
    %c0_13 = arith.constant 0 : index
    %17 = vector.load %arg6[%c0_12, %c0_13] : memref<1x256xbf16, #tpu.memory_space<vmem>>, vector<1x256xbf16>
    %18 = arith.extf %17 : vector<1x256xbf16> to vector<1x256xf32>
    %19 = vector.broadcast %18 : vector<1x256xf32> to vector<8x256xf32>
    %20 = arith.mulf %16, %19 : vector<8x256xf32>
    %cst_14 = arith.constant dense<0.000000e+00> : vector<8xf32>
    %21 = vector.multi_reduction <add>, %20, %cst_14 [1] : vector<8x256xf32> to vector<8xf32>
    %22 = vector.shape_cast %21 : vector<8xf32> to vector<8x1xf32>
    %c0_15 = arith.constant 0 : index
    %c0_16 = arith.constant 0 : index
    %23 = memref.load %arg7[%c0_15, %c0_16] : memref<1x1xf32, #tpu.memory_space<smem>>
    %24 = vector.broadcast %23 : f32 to vector<8x1xf32>
    %25 = arith.addf %22, %24 : vector<8x1xf32>
    %c0_17 = arith.constant 0 : index
    %c0_18 = arith.constant 0 : index
    %26 = vector.load %arg8[%c0_17, %c0_18] : memref<8x1xf32, #tpu.memory_space<vmem>>, vector<8x1xf32>
    tpu.vector_store %arg8[%c0_17, %c0_18], %25 {strides = array<i32>} : memref<8x1xf32, #tpu.memory_space<vmem>>, vector<8x1xf32>,
    return
  }
  func.func @transform_0(%arg0: i32) -> (i32, i32) {
    %c0_i32 = arith.constant 0 : i32
    %c0_i32_0 = arith.constant 0 : i32
    return %arg0, %c0_i32 : i32, i32
  }
  func.func @transform_1(%arg0: i32) -> (i32, i32) {
    %c0_i32 = arith.constant 0 : i32
    %c0_i32_0 = arith.constant 0 : i32
    %c0_i32_1 = arith.constant 0 : i32
    return %c0_i32, %c0_i32_0 : i32, i32
  }
  func.func @transform_2(%arg0: i32) -> (i32, i32) {
    %c0_i32 = arith.constant 0 : i32
    %c0_i32_0 = arith.constant 0 : i32
    %c0_i32_1 = arith.constant 0 : i32
    return %c0_i32, %c0_i32_0 : i32, i32
  }
  func.func @transform_3(%arg0: i32) -> (i32, i32) {
    %c0_i32 = arith.constant 0 : i32
    %c0_i32_0 = arith.constant 0 : i32
    %c0_i32_1 = arith.constant 0 : i32
    return %c0_i32, %c0_i32_0 : i32, i32
  }
  func.func @transform_4(%arg0: i32) -> (i32, i32) {
    %c0_i32 = arith.constant 0 : i32
    %c0_i32_0 = arith.constant 0 : i32
    %c0_i32_1 = arith.constant 0 : i32
    return %c0_i32, %c0_i32_0 : i32, i32
  }
  func.func @transform_5(%arg0: i32) -> (i32, i32) {
    %c0_i32 = arith.constant 0 : i32
    %c0_i32_0 = arith.constant 0 : i32
    %c0_i32_1 = arith.constant 0 : i32
    return %c0_i32, %c0_i32_0 : i32, i32
  }
  func.func @transform_6(%arg0: i32) -> (i32, i32) {
    %c0_i32 = arith.constant 0 : i32
    %c0_i32_0 = arith.constant 0 : i32
    %c0_i32_1 = arith.constant 0 : i32
    return %c0_i32, %c0_i32_0 : i32, i32
  }
  func.func @transform_7(%arg0: i32) -> (i32, i32) {
    %c0_i32 = arith.constant 0 : i32
    %c0_i32_0 = arith.constant 0 : i32
    return %arg0, %c0_i32 : i32, i32
  }
}

</mosaic_0001>

<bundles_post_ra>
// kernel: tpu_custom_call.1
= control target key start
LH: loop header
LB: loop body
LE: loop exit
PB: predicated region body
PF: predicated region fallthrough
CT: control target
= control target key end

     0   :  { %13 = vsyncpa [#allocation4], 0  ;;  %s719_s0 = inlined_call_operand.hbm [shape: f32[8,8], index: 0, kind: input, shape index: {}]   ;;  %s720_s1 = inlined_call_operand.hbm [shape: bf16[8,256], index: 1, kind: input, shape index: {}]   ;;  %s721_s2 = inlined_call_operand.vmem [shape: f32[1,256], index: 2, kind: input, shape index: {}]   ;;  %s722_s3 = inlined_call_operand.hbm [shape: bf16[256,256], index: 3, kind: input, shape index: {}]   ;;  %s723_s4 = inlined_call_operand.vmem [shape: f32[1,256], index: 4, kind: input, shape index: {}]   ;;  %s724_s5 = inlined_call_operand.vmem [shape: bf16[1,256], index: 5, kind: input, shape index: {}]   ;;  %s725_s6 = inlined_call_operand.<no memory space> [shape: f32[1,1], index: 6, kind: input, shape index: {}]   ;;  %s726_s7 = inlined_call_operand.vmem [shape: f32[8,1], index: 7, kind: output, shape index: {}]  }
   0x1   :  { %14 = vsyncpa [#allocation6], 0  ;;  %s31_s26 = sshll.u32 %s720_s1, 4  ;;  %s646_s27 = smov [#allocation5]   ;;  %s32_s26 = int_to_ptr.hbm [resolvable:$true] %s31_s26 }
   0x2   :  { %s33_s28 = sshll.u32 %s646_s27, 4  ;;  %s20_s8 = sshll.u32 %s719_s0, 4  ;;  %s34_s28 = int_to_ptr.vmem [resolvable:$true] %s33_s28  ;;  %s21_s8 = int_to_ptr.hbm [resolvable:$true] %s20_s8 }
   0x3   :  { %36 = dma.hbm_to_vmem [thread:$0]  %s32_s26, 128, %s34_s28, [#allocation6]  }
   0x4   :  { %s647_s9 = smov [#allocation3]   ;;  %s43_s13 = sshll.u32 %s722_s3, 4  ;;  %s44_s13 = int_to_ptr.hbm [resolvable:$true] %s43_s13 }
   0x5   :  { %s22_s10 = sshll.u32 %s647_s9, 4  ;;  %s648_s1 = smov [#allocation7]   ;;  %s23_s10 = int_to_ptr.vmem [resolvable:$true] %s22_s10 }
   0x6   :  { %25 = dma.hbm_to_vmem [thread:$0]  %s21_s8, 128, %s23_s10, [#allocation4]  }
   0x7   :  { %s45_s14 = sshll.u32 %s648_s1, 4  ;;  %s649_s15 = smov 128   ;;  %s46_s14 = int_to_ptr.vmem [resolvable:$true] %s45_s14 }
   0x8   :  { %s650_s16 = smov 8  }
   0x9   :  { %51 = dma.hbm_to_vmem [thread:$0]  %s44_s13, 4096, %s46_s14, [#allocation6], %s649_s15, %s649_s15, %s650_s16  }
   0xa   :  { %642 = dma.done.wait [#allocation4], 128  }
   0xb   :  { %643 = vsyncadd [#allocation4], 4294967168 }
   0xc   :  { %644 = dma.done.wait [#allocation6], 4224  }
   0xd   :  { %645 = vsyncadd [#allocation6], 4294963072  ;;  %v73_v0 = vld [vmem:[#allocation5] sm:$0xff]  ;;  %vm89_vm0 = vcmask 1043456   ;;  %v71_v1 = vld [vmem:[#allocation3] sm:$0xff]  ;;  %vm85_vm1 = vcmask 64512  }
   0xe   :  { %v463_v2 = vld [vmem:[#allocation7 + $0x70] sm:$0xf]  ;;  %v81_v3 = vunpack.c.l.b16 %v73_v0  ;;  %v82_v4 = vunpack.c.h.b16 %v73_v0  ;;  %v548_v5 = vld [vmem:[#allocation7 + $0x74] sm:$0xf0]  ;;  %v547_v10 = vld [vmem:[#allocation7 + $0x74] sm:$0xf]  ;;  %v72_v26 = vpack.c.bf16 %v71_v1, %v71_v1 }
   0xf   :  { %v527_v6 = vld [vmem:[#allocation7 + $0xf0] sm:$0xf]  ;;  %v564_v7 = vld [vmem:[#allocation7 + $0xf4] sm:$0xf0]  ;;  %v464_v8 = vor.u32 %v548_v5, %v463_v2  ;;  %v465_v11 = vld [vmem:[#allocation7 + $0x78] sm:$0xf0] }
  0x10   :  { %v528_v9 = vor.u32 %v564_v7, %v527_v6  ;;  %v563_v12 = vld [vmem:[#allocation7 + $0xf4] sm:$0xf]  ;;  %v83_v13 = vpack.c.b16 %v81_v3, %v81_v3  ;;  %v84_v14 = vpack.c.b16 %v82_v4, %v82_v4  ;;  %v468_v15 = vor.u32 %v547_v10, %v465_v11  ;;  %v529_v16 = vld [vmem:[#allocation7 + $0xf8] sm:$0xf0]  ;;  %v455_v17 = vld [vmem:[#allocation7 + $0x60] sm:$0xf] }
  0x11   :  { %v546_v18 = vld [vmem:[#allocation7 + $0x64] sm:$0xf0]  ;;  %324 = vmatpush.bf16.msra.mxu2 %v464_v8  ;;  %v532_v19 = vor.u32 %v563_v12, %v529_v16  ;;  %v519_v21 = vld [vmem:[#allocation7 + $0xe0] sm:$0xf]  ;;  %v545_v23 = vld [vmem:[#allocation7 + $0x64] sm:$0xf] }
  0x12   :  { %337 = vmatpush.bf16.msra.mxu3 %v528_v9  ;;  %v456_v20 = vor.u32 %v546_v18, %v455_v17  ;;  %v562_v22 = vld [vmem:[#allocation7 + $0xe4] sm:$0xf0]  ;;  %v91_v24 = vsel %vm89_vm0, %v83_v13, 0  ;;  %v94_v25 = vsel %vm89_vm0, %v84_v14, 0  ;;  %v457_v28 = vld [vmem:[#allocation7 + $0x68] sm:$0xf0] }
  0x13   :  { %v520_v27 = vor.u32 %v562_v22, %v519_v21  ;;  %v561_v29 = vld [vmem:[#allocation7 + $0xe4] sm:$0xf]  ;;  %103 = vmatpush.bf16.msra.mxu0 %v91_v24  ;;  %116 = vmatpush.bf16.msra.mxu1 %v94_v25  ;;  %v521_v30 = vld [vmem:[#allocation7 + $0xe8] sm:$0xf0]  ;;  %v447_v31 = vld [vmem:[#allocation7 + $0x50] sm:$0xf]  ;;  %v460_v33 = vor.u32 %v545_v23, %v457_v28 }
  0x14   :  { %v544_v32 = vld [vmem:[#allocation7 + $0x54] sm:$0xf0]  ;;  %v524_v34 = vor.u32 %v561_v29, %v521_v30  ;;  %v511_v35 = vld [vmem:[#allocation7 + $0xd0] sm:$0xf]  ;;  %v543_v37 = vld [vmem:[#allocation7 + $0x54] sm:$0xf] }
  0x15   :  { %v560_v36 = vld [vmem:[#allocation7 + $0xd4] sm:$0xf0]  ;;  %325 = vmatpush.bf16.msra.mxu2 %v456_v20  ;;  %v448_v38 = vor.u32 %v544_v32, %v447_v31  ;;  %v449_v40 = vld [vmem:[#allocation7 + $0x58] sm:$0xf0]  ;;  %v559_v41 = vld [vmem:[#allocation7 + $0xd4] sm:$0xf] }
  0x16   :  { %338 = vmatpush.bf16.msra.mxu3 %v520_v27  ;;  %v512_v39 = vor.u32 %v560_v36, %v511_v35  ;;  %v513_v42 = vld [vmem:[#allocation7 + $0xd8] sm:$0xf0]  ;;  %403 = vmatmul.msk.bf16.vlgmr.msra.gmra.mxu0 %vm85_vm1, %v72_v26  ;;  %v439_v43 = vld [vmem:[#allocation7 + $0x40] sm:$0xf]  ;;  %v542_v44 = vld [vmem:[#allocation7 + $0x44] sm:$0xf0]  ;;  %v452_v47 = vor.u32 %v543_v37, %v449_v40 }
  0x17   :  { %350 = vmatpush.bf16.msrb.mxu0 %v468_v15  ;;  %363 = vmatpush.bf16.msrb.mxu1 %v532_v19  ;;  %v503_v45 = vld [vmem:[#allocation7 + $0xc0] sm:$0xf]  ;;  %v558_v46 = vld [vmem:[#allocation7 + $0xc4] sm:$0xf0]  ;;  %v516_v48 = vor.u32 %v559_v41, %v513_v42  ;;  %v541_v49 = vld [vmem:[#allocation7 + $0x44] sm:$0xf]  ;;  %v440_v51 = vor.u32 %v542_v44, %v439_v43 }
  0x18   :  { %404 = vmatmul.msk.bf16.vlgmr.msra.gmra.mxu1 %vm85_vm1, %v72_v26  ;;  %v441_v50 = vld [vmem:[#allocation7 + $0x48] sm:$0xf0]  ;;  %v504_v52 = vor.u32 %v558_v46, %v503_v45  ;;  %v557_v53 = vld [vmem:[#allocation7 + $0xc4] sm:$0xf]  ;;  %v431_v55 = vld [vmem:[#allocation7 + $0x30] sm:$0xf] }
  0x19   :  { %326 = vmatpush.bf16.msra.mxu2 %v448_v38  ;;  %v505_v54 = vld [vmem:[#allocation7 + $0xc8] sm:$0xf0]  ;;  %v540_v56 = vld [vmem:[#allocation7 + $0x34] sm:$0xf0]  ;;  %v495_v57 = vld [vmem:[#allocation7 + $0xb0] sm:$0xf]  ;;  %v444_v59 = vor.u32 %v541_v49, %v441_v50 }
  0x1a   :  { %339 = vmatpush.bf16.msra.mxu3 %v512_v39  ;;  %v556_v58 = vld [vmem:[#allocation7 + $0xb4] sm:$0xf0]  ;;  %v508_v60 = vor.u32 %v557_v53, %v505_v54  ;;  %v539_v61 = vld [vmem:[#allocation7 + $0x34] sm:$0xf]  ;;  %v433_v62 = vld [vmem:[#allocation7 + $0x38] sm:$0xf0]  ;;  %v432_v63 = vor.u32 %v540_v56, %v431_v55 }
  0x1b   :  { %351 = vmatpush.bf16.msrb.mxu0 %v460_v33  ;;  %364 = vmatpush.bf16.msrb.mxu1 %v524_v34  ;;  %v496_v0 = vor.u32 %v556_v58, %v495_v57  ;;  %v555_v1 = vld [vmem:[#allocation7 + $0xb4] sm:$0xf]  ;;  %v497_v2 = vld [vmem:[#allocation7 + $0xb8] sm:$0xf0]  ;;  %v423_v3 = vld [vmem:[#allocation7 + $0x20] sm:$0xf]  ;;  %v436_v7 = vor.u32 %v539_v61, %v433_v62 }
  0x1c   :  { %v538_v4 = vld [vmem:[#allocation7 + $0x24] sm:$0xf0]  ;;  %v487_v5 = vld [vmem:[#allocation7 + $0xa0] sm:$0xf]  ;;  %v500_v8 = vor.u32 %v555_v1, %v497_v2  ;;  %v537_v9 = vld [vmem:[#allocation7 + $0x24] sm:$0xf] }
  0x1d   :  { %327 = vmatpush.bf16.msra.mxu2 %v440_v51  ;;  %v554_v6 = vld [vmem:[#allocation7 + $0xa4] sm:$0xf0]  ;;  %v424_v10 = vor.u32 %v538_v4, %v423_v3  ;;  %v425_v12 = vld [vmem:[#allocation7 + $0x28] sm:$0xf0]  ;;  %v553_v13 = vld [vmem:[#allocation7 + $0xa4] sm:$0xf] }
  0x1e   :  { %340 = vmatpush.bf16.msra.mxu3 %v504_v52  ;;  %v488_v11 = vor.u32 %v554_v6, %v487_v5  ;;  %v489_v14 = vld [vmem:[#allocation7 + $0xa8] sm:$0xf0]  ;;  %v428_v15 = vor.u32 %v537_v9, %v425_v12  ;;  %v415_v17 = vld [vmem:[#allocation7 + $0x10] sm:$0xf]  ;;  %v536_v18 = vld [vmem:[#allocation7 + $0x14] sm:$0xf0] }
  0x1f   :  { %352 = vmatpush.bf16.msrb.mxu0 %v452_v47  ;;  %365 = vmatpush.bf16.msrb.mxu1 %v516_v48  ;;  %v492_v16 = vor.u32 %v553_v13, %v489_v14  ;;  %v479_v19 = vld [vmem:[#allocation7 + $0x90] sm:$0xf]  ;;  %v416_v20 = vor.u32 %v536_v18, %v415_v17  ;;  %v552_v21 = vld [vmem:[#allocation7 + $0x94] sm:$0xf0]  ;;  %v535_v22 = vld [vmem:[#allocation7 + $0x14] sm:$0xf] }
  0x20   :  { %v417_v23 = vld [vmem:[#allocation7 + $0x18] sm:$0xf0]  ;;  %v480_v24 = vor.u32 %v552_v21, %v479_v19  ;;  %v551_v26 = vld [vmem:[#allocation7 + $0x94] sm:$0xf]  ;;  %v407_v29 = vld [vmem:[#allocation7] sm:$0xf] }
  0x21   :  { %328 = vmatpush.bf16.msra.mxu2 %v432_v63  ;;  %v420_v25 = vor.u32 %v535_v22, %v417_v23  ;;  %v481_v27 = vld [vmem:[#allocation7 + $0x98] sm:$0xf0]  ;;  %v534_v30 = vld [vmem:[#allocation7 + $0x4] sm:$0xf0]  ;;  %v471_v31 = vld [vmem:[#allocation7 + $0x80] sm:$0xf] }
  0x22   :  { %341 = vmatpush.bf16.msra.mxu3 %v496_v0  ;;  %v484_v28 = vor.u32 %v551_v26, %v481_v27  ;;  %v408_v32 = vor.u32 %v534_v30, %v407_v29  ;;  %v550_v33 = vld [vmem:[#allocation7 + $0x84] sm:$0xf0]  ;;  %v533_v34 = vld [vmem:[#allocation7 + $0x4] sm:$0xf]  ;;  %v409_v35 = vld [vmem:[#allocation7 + $0x8] sm:$0xf0] }
  0x23   :  { %353 = vmatpush.bf16.msrb.mxu0 %v444_v59  ;;  %366 = vmatpush.bf16.msrb.mxu1 %v508_v60  ;;  %v472_v36 = vor.u32 %v550_v33, %v471_v31  ;;  %v412_v37 = vor.u32 %v533_v34, %v409_v35  ;;  %v549_v38 = vld [vmem:[#allocation7 + $0x84] sm:$0xf]  ;;  %v473_v39 = vld [vmem:[#allocation7 + $0x88] sm:$0xf0]  ;;  %v74_v41 = vld [vmem:[%s721_s2] sm:$0x3] }
  0x24   :  { %v476_v40 = vor.u32 %v549_v38, %v473_v39  ;;  %v76_v42 = vperm.slane %v74_v41, 0  ;;  %v77_v43 = vperm.slane %v74_v41, 1  ;;  %v158_v54 = vld [vmem:[%s723_s4] sm:$0x3]  ;;  %vm395_vm2 = vcmask 7168  }
  0x25   :  { %329 = vmatpush.bf16.msra.mxu2 %v424_v10  ;;  %v161_v55 = vperm.slane %v158_v54, 1  ;;  %v378_v56 = vld [vmem:[%s724_s5] sm:$0x3]  ;;  %v160_v61 = vperm.slane %v158_v54, 0 }
  0x26   :  { %342 = vmatpush.bf16.msra.mxu3 %v488_v11  ;;  %v379_v59 = vunpack.c.l.bf16 %v378_v56 }
  0x27   :  { %354 = vmatpush.bf16.msrb.mxu0 %v436_v7  ;;  %367 = vmatpush.bf16.msrb.mxu1 %v500_v8 }
  0x28   :  { %v381_v63 = vperm.slane %v379_v59, 0  ;;  %v382_v0 = vperm.slane %v379_v59, 2 }
  0x29   :  { %330 = vmatpush.bf16.msra.mxu2 %v416_v20 }
  0x2a   :  { %343 = vmatpush.bf16.msra.mxu3 %v480_v24  ;;  %v385_v8 = vperm.slane %v381_v63, 0  ;;  %v386_v9 = vperm.slane %v382_v0, 0 }
  0x2b   :  { %355 = vmatpush.bf16.msrb.mxu0 %v428_v15  ;;  %368 = vmatpush.bf16.msrb.mxu1 %v492_v16  ;;  %v393_v16 = vstv %s725_s6 }
  0x2d   :  { %331 = vmatpush.bf16.msra.mxu2 %v408_v32 }
  0x2e   :  { %344 = vmatpush.bf16.msra.mxu3 %v472_v36 }
  0x2f   :  { %356 = vmatpush.bf16.msrb.mxu0 %v420_v25  ;;  %369 = vmatpush.bf16.msrb.mxu1 %v484_v28 }
  0x33   :  { %357 = vmatpush.bf16.msrb.mxu0 %v412_v37  ;;  %370 = vmatpush.bf16.msrb.mxu1 %v476_v40 }
  0x93   :  { %v105_v44 = vpop.f32.mrf.mxu0 }
  0x94   :  { %v106_v46 = vadd.f32 %v105_v44, %v76_v42 }
  0x95   :  { %v118_v45 = vpop.f32.mrf.mxu1 }
  0x96   :  { %v119_v47 = vadd.f32 %v118_v45, %v77_v43  ;;  %v122_v48 = vmax.f32 %v106_v46, 0.0 }
  0x98   :  { %v123_v49 = vmax.f32 %v119_v47, 0.0  ;;  %v124_v50 = vpack.c.bf16 %v122_v48, %v122_v48 }
  0x9a   :  { %v125_v51 = vpack.c.bf16 %v123_v49, %v123_v49  ;;  %332 = vmatmul.bf16.vlgmr.msra.gmra.mxu2 %v124_v50  ;;  %358 = vmatmul.bf16.vlgmr.msrb.gmra.mxu0 %v124_v50 }
  0x9b   :  { %v107_v52 = vpop.f32.mrf.mxu0 }
  0x9c   :  { %345 = vmatmul.bf16.vlgmr.msra.gmra.mxu3 %v125_v51  ;;  %371 = vmatmul.bf16.vlgmr.msrb.gmra.mxu1 %v125_v51 }
  0x9d   :  { %v120_v53 = vpop.f32.mrf.mxu1 }
 0x117   :  { %v359_v57 = vpop.f32.mrf.mxu0 }
 0x118   :  { %v360_v60 = vadd.f32 %v359_v57, %v161_v55 }
 0x119   :  { %v372_v58 = vpop.f32.mrf.mxu1 }
 0x11a   :  { %v373_v62 = vadd.f32 %v372_v58, %v360_v60 }
 0x11c   :  { %v377_v4 = vmax.f32 %v373_v62, 0.0 }
 0x11d   :  { %v333_v1 = vpop.f32.mrf.mxu2 }
 0x11e   :  { %v334_v3 = vadd.f32 %v333_v1, %v160_v61  ;;  %v388_v12 = vmul.f32 %v386_v9, %v377_v4 }
 0x11f   :  { %v346_v2 = vpop.f32.mrf.mxu3  ;;  %v361_v6 = vpop.f32.mrf.mxu0 }
 0x120   :  { %v347_v5 = vadd.f32 %v346_v2, %v334_v3 }
 0x121   :  { %v374_v7 = vpop.f32.mrf.mxu1 }
 0x122   :  { %v376_v10 = vmax.f32 %v347_v5, 0.0 }
 0x124   :  { %v387_v11 = vmul.f32 %v385_v8, %v376_v10 }
 0x125   :  { %v335_v13 = vpop.f32.mrf.mxu2 }
 0x126   :  { %v389_v15 = vadd.f32 %v388_v12, %v387_v11 }
 0x127   :  { %v348_v14 = vpop.f32.mrf.mxu3 }
 0x128   :  { %390 = vadd.xlane.f32.xlu0 %v389_v15 }
 0x19b   :  { %v391_v17 = vpop.xlane.xlu0 %390 }
 0x19c   :  { %v394_v18 = vadd.f32 %v393_v16, %v391_v17 }
 0x19e   :  { %396 = vst.msk [vmem:[%s726_s7] sm:$0xff] %vm395_vm2, %v394_v18 }
 0x19f   :  { %401 = vsyncpa [#allocation4], 1 }
 0x1a0   :  { %402 = vsyncpa [#allocation6], 1 }

</bundles_post_ra>
